<compile_context>
chip_gen: v6e
topology: v6e:2x2x1
jax: 0.10.0
libtpu: 0.0.40
codegen_flags: <defaults>
</compile_context>

<pallas_src>
import math
import functools

import jax
import jax.numpy as jnp
from jax.experimental import pallas as pl
from jax.experimental.pallas import tpu as pltpu


def make_positional_encoding_pe(seq_len: int, d_model: int,
                                dtype=jnp.float32) -> jnp.ndarray:
    """Deterministic buffer construction (module __init__): returns (1, seq_len, d_model)."""
    position = jnp.arange(seq_len, dtype=jnp.float32)[:, None]                    # (S, 1)
    div_term = jnp.exp(
        jnp.arange(0, d_model, 2, dtype=jnp.float32) * -(math.log(10000.0) / d_model)
    )                                                                              # (D/2,)
    angles = position * div_term                                                   # (S, D/2)
    pe = jnp.zeros((seq_len, d_model), dtype=jnp.float32)
    pe = pe.at[:, 0::2].set(jnp.sin(angles))
    pe = pe.at[:, 1::2].set(jnp.cos(angles))
    return pe[None, :, :].astype(dtype)                                            # (1, S, D)


def _add_pe_kernel(seed_ref, x_ref, pe_ref, o_ref, *,
                   dropout_p, train, scale, keep_threshold):
    """One lane-dense block: x_ref (B, tR, 128) + pe_ref (1, tR, 128) bcast, then dropout."""
    y = x_ref[...] + pe_ref[...]
    if train and dropout_p > 0.0:
        # Inverted dropout (torch.nn.Dropout train semantics).  Grid step is an
        # independent seed word so per-tile streams never collide across base seeds.
        pltpu.prng_seed(seed_ref[0], pl.program_id(0))
        bits = pltpu.bitcast(pltpu.prng_random_bits(y.shape), jnp.uint32)
        keep = bits < jnp.uint32(keep_threshold)
        mask = jnp.where(keep, jnp.float32(scale), jnp.float32(0.0))
        # Apply keep-scale in f32 so 1/(1-p) is not pre-rounded to bf16.
        y = (y.astype(jnp.float32) * mask).astype(o_ref.dtype)
        # TODO(synk): RNG stream differs from torch's dropout RNG (only statistics match).
    o_ref[...] = y


def _pick_row_tile(num_rows: int, batch: int, row_width: int, itemsize: int,
                   budget_bytes: int = 12 * 1024 * 1024) -> int:
    """Largest legal row tile whose double-buffered VMEM footprint fits the budget.

    Footprint per row of tile: x in (2 bufs) + out (2 bufs) -> 4*B rows, pe (2 bufs)
    -> 2 rows.  Budget stays well under the 32 MiB scoped window (and v7x 64 MiB part).
    """
    sub = max(8, 32 // itemsize)                       # 8 (f32) / 16 (bf16) / 32 (int8)
    per_row_bytes = (4 * batch + 2) * row_width * itemsize
    cap = max(1, budget_bytes // per_row_bytes)
    if num_rows <= cap:
        tr = num_rows                                  # full dim — always a legal block dim
    else:
        tr = max(sub, (cap // sub) * sub)              # dtype-aware sublane multiple
    # v7x: guarantee >=2 grid steps along the (only) "parallel" axis so both TCs get work.
    if pl.cdiv(num_rows, tr) < 2 and num_rows >= 2 * sub:
        half = pl.cdiv(num_rows, 2)
        tr = max(sub, ((half + sub - 1) // sub) * sub)
    return tr


def positional_encoding_forward(x: jnp.ndarray,
                                pe: jnp.ndarray,
                                dropout_p: float = 0.0,
                                train: bool = False,
                                seed: int = 0) -> jnp.ndarray:
    """x: (B, S, D); pe: (1, seq_len, D) with seq_len >= S.  Output dtype == x.dtype."""
    B, S, D = x.shape
    dtype = x.dtype

    # Hoisted in the common case: pass a pre-cast, exact-length pe and this is a no-op.
    if pe.shape[1] == S and pe.dtype == dtype:
        pe_win = pe
    else:
        pe_win = pe[:, :S, :].astype(dtype)

    # Always lane-dense: fold (S, D) into rows of exactly 128 lanes; zero-pad the
    # flattened tail when S*D is not a multiple of 128 (pad is sliced off after).
    flat = S * D
    C = 128
    R = pl.cdiv(flat, C)
    padded = R * C
    x2 = x.reshape(B, flat)
    pe2 = pe_win.reshape(1, flat)
    if padded != flat:
        x2 = jnp.pad(x2, ((0, 0), (0, padded - flat)))
        pe2 = jnp.pad(pe2, ((0, 0), (0, padded - flat)))
    x3 = x2.reshape(B, R, C)
    pe3 = pe2.reshape(1, R, C)

    itemsize = jnp.dtype(dtype).itemsize
    tR = _pick_row_tile(R, B, C, itemsize)
    num_r_tiles = pl.cdiv(R, tR)

    keep_prob = 1.0 - float(dropout_p)
    keep_threshold = min(int(round(keep_prob * float(2**32))), 2**32 - 1)
    kernel = functools.partial(
        _add_pe_kernel,
        dropout_p=float(dropout_p),
        train=bool(train),
        scale=(1.0 / keep_prob) if keep_prob > 0.0 else 0.0,
        keep_threshold=keep_threshold,
    )

    seed_arr = jnp.asarray([seed], dtype=jnp.int32)

    out3 = pl.pallas_call(
        kernel,
        out_shape=jax.ShapeDtypeStruct((B, R, C), dtype),
        grid_spec=pltpu.PrefetchScalarGridSpec(
            num_scalar_prefetch=1,                      # dropout base seed lives in SMEM
            grid=(num_r_tiles,),                        # batch folded into the block
            in_specs=[
                pl.BlockSpec((B, tR, C), lambda r, seed: (0, r, 0)),   # x tile (whole batch)
                pl.BlockSpec((1, tR, C), lambda r, seed: (0, r, 0)),   # pe tile (bcast in-kernel)
            ],
            out_specs=pl.BlockSpec((B, tR, C), lambda r, seed: (0, r, 0)),
        ),
        compiler_params=pltpu.CompilerParams(
            dimension_semantics=("parallel",),          # shards row tiles across v7x TCs
            vmem_limit_bytes=32 * 1024 * 1024,
        ),
    )(seed_arr, x3, pe3)

    out = out3.reshape(B, padded)
    if padded != flat:
        out = out[:, :flat]
    return out.reshape(B, S, D)


if __name__ == "__main__":
    # Small shapes consistent with the module: batch=2, seq=8, d_model=32.
    d_model = 32
    seq_len = 8
    batch = 2
    dropout_p = 0.1  # stored by the module; demo runs eval mode -> dropout is identity

    key = jax.random.PRNGKey(0)
    x = jax.random.normal(key, (batch, seq_len, d_model), dtype=jnp.float32)

    pe = make_positional_encoding_pe(seq_len, d_model, dtype=x.dtype)

    out = positional_encoding_forward(x, pe, dropout_p=dropout_p, train=False)
    out = jax.block_until_ready(out)

    # Sanity check against pure-JAX reference (eval-mode dropout == identity).
    ref = x + pe[:, :seq_len, :]
    assert out.shape == x.shape
    assert out.dtype == x.dtype
    assert jnp.allclose(out, ref, atol=1e-6), "mismatch vs reference"

    print("KERNEL_OK")
</pallas_src>

<mosaic_0001>
module attributes {stable_mosaic.version = 11 : i64} {
  func.func @_add_pe_kernel(%arg0: i32, %arg1: memref<1xi32, #tpu.memory_space<smem>>, %arg2: memref<2x2x128xf32, #tpu.memory_space<vmem>>, %arg3: memref<1x2x128xf32, #tpu.memory_space<vmem>>, %arg4: memref<2x2x128xf32, #tpu.memory_space<vmem>>) attributes {dimension_semantics = [#tpu.dimension_semantics<parallel>], iteration_bounds = array<i64: 1>, scalar_prefetch = 1 : i64, scratch_operands = 0 : i64, tpu.core_type = #tpu.core_type<tc>, window_params = [{transform_indices = @transform_0, window_bounds = array<i64: 2, 2, 128>}, {transform_indices = @transform_1, window_bounds = array<i64: 1, 2, 128>}, {transform_indices = @transform_2, window_bounds = array<i64: 2, 2, 128>}]} {
    %c0 = arith.constant 0 : index
    %c0_0 = arith.constant 0 : index
    %c0_1 = arith.constant 0 : index
    %0 = vector.load %arg2[%c0, %c0_0, %c0_1] : memref<2x2x128xf32, #tpu.memory_space<vmem>>, vector<2x2x128xf32>
    %c0_2 = arith.constant 0 : index
    %c0_3 = arith.constant 0 : index
    %c0_4 = arith.constant 0 : index
    %1 = vector.load %arg3[%c0_2, %c0_3, %c0_4] : memref<1x2x128xf32, #tpu.memory_space<vmem>>, vector<1x2x128xf32>
    %2 = vector.broadcast %1 : vector<1x2x128xf32> to vector<2x2x128xf32>
    %3 = arith.addf %0, %2 : vector<2x2x128xf32>
    %c0_5 = arith.constant 0 : index
    %c0_6 = arith.constant 0 : index
    %c0_7 = arith.constant 0 : index
    %4 = vector.load %arg4[%c0_5, %c0_6, %c0_7] : memref<2x2x128xf32, #tpu.memory_space<vmem>>, vector<2x2x128xf32>
    tpu.vector_store %arg4[%c0_5, %c0_6, %c0_7], %3 {strides = array<i32>} : memref<2x2x128xf32, #tpu.memory_space<vmem>>, vector<2x2x128xf32>,
    return
  }
  func.func @transform_0(%arg0: i32, %arg1: memref<1xi32, #tpu.memory_space<smem>>) -> (i32, i32, i32) {
    %c0_i32 = arith.constant 0 : i32
    %c0_i32_0 = arith.constant 0 : i32
    %c0_i32_1 = arith.constant 0 : i32
    return %c0_i32, %arg0, %c0_i32_0 : i32, i32, i32
  }
  func.func @transform_1(%arg0: i32, %arg1: memref<1xi32, #tpu.memory_space<smem>>) -> (i32, i32, i32) {
    %c0_i32 = arith.constant 0 : i32
    %c0_i32_0 = arith.constant 0 : i32
    %c0_i32_1 = arith.constant 0 : i32
    return %c0_i32, %arg0, %c0_i32_0 : i32, i32, i32
  }
  func.func @transform_2(%arg0: i32, %arg1: memref<1xi32, #tpu.memory_space<smem>>) -> (i32, i32, i32) {
    %c0_i32 = arith.constant 0 : i32
    %c0_i32_0 = arith.constant 0 : i32
    %c0_i32_1 = arith.constant 0 : i32
    return %c0_i32, %arg0, %c0_i32_0 : i32, i32, i32
  }
}

</mosaic_0001>

<bundles_post_ra>
// kernel: tpu_custom_call.1
= control target key start
LH: loop header
LB: loop body
LE: loop exit
PB: predicated region body
PF: predicated region fallthrough
CT: control target
= control target key end

     0   :  { %9 = vsyncpa [#allocation5], 0  ;;  %s133_s0 = inlined_call_operand.<no memory space> [shape: s32[1], index: 0, kind: input, shape index: {}]   ;;  %s134_s1 = inlined_call_operand.hbm [shape: f32[2,2,128], index: 1, kind: input, shape index: {}]   ;;  %s135_s2 = inlined_call_operand.vmem [shape: f32[1,2,128], index: 2, kind: input, shape index: {}]   ;;  %s136_s3 = inlined_call_operand.hbm [shape: f32[2,2,128], index: 3, kind: output, shape index: {}]  }
   0x1   :  { %10 = vsyncpa [#allocation6], 0  ;;  %s100_s12 = smov [#allocation4]  }
   0x2   :  { %s16_s13 = sshll.u32 %s100_s12, 4  ;;  %s17_s13 = int_to_ptr.vmem [resolvable:$true] %s16_s13 }
   0x3   :  { %s64_s14 = scalar_lea.vmem %s17_s13, 64  ;;  %p69_p1 = scmp.lt.s32.totalorder %s17_s13, %s17_s13 }
   0x4   :  { %p65_p0 = scmp.ne.s32.totalorder %s17_s13, %s64_s14  ;;  %p70_p2 = scmp.lt.s32.totalorder %s64_s14, %s64_s14 }
   0x6   :  { %p71_p3 = por %p70_p2, %p69_p1 }
   0x8   :  { %p72_p4 = pnand %p71_p3, %p65_p0 }
   0xa   :  { %75 = shalt.err (!%p72_p4)
}
   0xb   :  { %s101_s0 = smov 32   ;;  %s102_s15 = smov 2  }
   0xc   :  { %22 = dma.hbm_to_vmem [thread:$0]  %s134_s1, 64, %s17_s13, [#allocation5], %s101_s0, %s101_s0, %s102_s15  }
   0xd   :  { %96 = dma.done.wait [#allocation5], 64  }
   0xe   :  { %97 = vsyncadd [#allocation5], 4294967232  ;;  %s103_s18 = smov [#allocation7]   ;;  %v28_v0 = vld [vmem:[#allocation4] sm:$0x3] }
   0xf   :  { %s40_s19 = sshll.u32 %s103_s18, 4  ;;  %v30_v1 = vld [vmem:[%s135_s2] sm:$0x3]  ;;  %v29_v2 = vld [vmem:[#allocation4 + $0x2] sm:$0x3]  ;;  %s41_s19 = int_to_ptr.vmem [resolvable:$true] %s40_s19 }
  0x10   :  { %v31_v3 = vadd.f32 %v30_v1, %v28_v0  ;;  %v32_v4 = vadd.f32 %v30_v1, %v29_v2  ;;  %s76_s22 = scalar_lea.vmem %s41_s19, 64  ;;  %p81_p6 = scmp.lt.s32.totalorder %s41_s19, %s41_s19 }
  0x11   :  { %p77_p5 = scmp.ne.s32.totalorder %s41_s19, %s76_s22  ;;  %p82_p7 = scmp.lt.s32.totalorder %s76_s22, %s76_s22 }
  0x12   :  { %33 = vst [vmem:[#allocation7] sm:$0x3] %v31_v3  ;;  %34 = vst [vmem:[#allocation7 + $0x2] sm:$0x3] %v32_v4 }
  0x13   :  { %p83_p8 = por %p82_p7, %p81_p6 }
  0x15   :  { %p84_p9 = pnand %p83_p8, %p77_p5 }
  0x17   :  { %87 = shalt.err (!%p84_p9)
}
  0x18   :  { %46 = dma.vmem_to_hbm [thread:$0]  %s41_s19, 64, %s136_s3, [#allocation6], %s101_s0, %s101_s0, %s102_s15  }
  0x19   :  { %98 = dma.done.wait [#allocation6], 64  }
  0x1a   :  { %99 = vsyncadd [#allocation6], 4294967232 }
  0x1b   :  { %50 = vsyncpa [#allocation5], 1 }
  0x1c   :  { %51 = vsyncpa [#allocation6], 1 }

</bundles_post_ra>
